<compile_context>
chip_gen: v7x
topology: tpu7x:2x2x1
jax: 0.10.0
libtpu: 0.0.40
codegen_flags: <defaults>
</compile_context>

<pallas_src>
import functools

import jax
import jax.numpy as jnp
from jax import lax
from jax.experimental import pallas as pl
from jax.experimental.pallas import tpu as pltpu

_EPS = 1e-6                     # F.pairwise_distance default eps (added to the diff)
_TARGET_TILE_BYTES = 2 << 20    # ~2 MiB per embedding input block (per review)


def _multi_tensorcore():
    """True on chips with 2 TensorCores sharing HBM (v7x, megacore v4/v5p)."""
    try:
        kind = jax.devices()[0].device_kind.lower()
    except Exception:
        return False
    return any(tag in kind for tag in ("v7", "7x", "v4", "v5p"))


def _contrastive_loss_kernel(t_ref, i_ref, l_ref, o_ref, acc_ref, *,
                             margin, pos_weight, neg_weight,
                             n_total, tile_n, tiles_per_chunk):
    t_step = pl.program_id(1)

    @pl.when(t_step == 0)
    def _init():
        acc_ref[...] = jnp.zeros_like(acc_ref)

    # Stream native dtype from HBM, do the math in f32 in VMEM.
    t = t_ref[...].astype(jnp.float32)                         # (tile_n, D)
    im = i_ref[...].astype(jnp.float32)                        # (tile_n, D)
    diff = t - im + _EPS
    # Reduce over D; rank-1 result maps to lanes, so the (1, tile_n) view is the
    # lane-dense layout (one sublane->lane relayout; XLU is idle in this kernel).
    # TODO(synk): on v7x with bf16 inputs, the D-reduction could be offloaded to
    # the idle MXU via jnp.dot(diff*diff, ones((D,1))) if VALU becomes the limiter.
    sq = jnp.sum(diff * diff, axis=-1).reshape(1, tile_n)      # dist**2, lane-dense
    dist = jnp.sqrt(sq)                                        # (1, tile_n)

    labels = l_ref[0]                                          # (1, tile_n), lane-dense f32
    pos_loss = pos_weight * labels * sq
    hinge = jnp.maximum(margin - dist, 0.0)
    neg_loss = neg_weight * (1.0 - labels) * hinge * hinge
    per_row = pos_loss + neg_loss                              # (1, tile_n)

    # Mask padded / duplicated rows (ragged last tile and clamped overrun tiles
    # of the multi-core split) so they contribute exactly 0 to the sum.
    global_tile = pl.program_id(0) * tiles_per_chunk + t_step
    row_ids = global_tile * tile_n + lax.broadcasted_iota(jnp.int32, (1, tile_n), 1)
    per_row = jnp.where(row_ids < n_total, per_row, 0.0)

    # Running per-chunk SUM; divide by N once, outside the kernel.
    acc_ref[...] += jnp.sum(per_row, axis=1, keepdims=True)    # (1, 1)

    @pl.when(t_step == pl.num_programs(1) - 1)
    def _finalize():
        o_ref[0] = acc_ref[...]                                # single write per chunk


def contrastive_loss(text_embeds, image_embeds, labels,
                     margin=1.0, pos_weight=1.0, neg_weight=1.0, tile_n=None):
    """text_embeds, image_embeds: (N, D); labels: (N,). Returns scalar f32 loss."""
    n, d = text_embeds.shape
    itemsize = jnp.dtype(text_embeds.dtype).itemsize

    # --- tile sizing: by bytes, not rows; rounded to a multiple of 128 rows ---
    if tile_n is None:
        tile_n = max(1, _TARGET_TILE_BYTES // (d * itemsize))
    tile_n = max(128, (int(tile_n) // 128) * 128)
    if n <= tile_n:
        tile_n = n                      # single full-extent block; no padding rules
    num_tiles = pl.cdiv(n, tile_n)

    # --- 2-chunk outer axis only on multi-TensorCore chips (v7x / megacore) ---
    num_chunks = 2 if (_multi_tensorcore() and num_tiles >= 2) else 1
    tiles_per_chunk = pl.cdiv(num_tiles, num_chunks)

    # --- lane-dense labels slab: (num_tiles, 1, tile_n), zero-padded tail ---
    labels_f32 = labels.reshape(-1).astype(jnp.float32)
    padded = num_tiles * tile_n
    if padded != n:
        labels_f32 = jnp.pad(labels_f32, (0, padded - n))
    labels_slab = labels_f32.reshape(num_tiles, 1, tile_n)

    last_tile = num_tiles - 1

    def emb_map(c, t):
        return (jnp.minimum(c * tiles_per_chunk + t, last_tile), 0)

    def lbl_map(c, t):
        return (jnp.minimum(c * tiles_per_chunk + t, last_tile), 0, 0)

    kernel = functools.partial(
        _contrastive_loss_kernel,
        margin=float(margin), pos_weight=float(pos_weight),
        neg_weight=float(neg_weight), n_total=n, tile_n=tile_n,
        tiles_per_chunk=tiles_per_chunk)

    # Explicit VMEM budget: 2 embedding inputs x 2 pipeline buffers + labels.
    emb_block_bytes = tile_n * d * itemsize
    vmem_need = 2 * 2 * emb_block_bytes + 2 * tile_n * 4 + (64 << 10)
    vmem_limit = int(min(max(2 * vmem_need, 32 << 20), 64 << 20))

    # TODO(synk): add pipeline_mode=pl.Buffered(3) on the embedding specs only if
    # profiling still shows exposed DMA after the byte-sized tiles.
    partial_sums = pl.pallas_call(
        kernel,
        out_shape=jax.ShapeDtypeStruct((num_chunks, 1, 1), jnp.float32),
        grid_spec=pltpu.PrefetchScalarGridSpec(
            num_scalar_prefetch=0,
            grid=(num_chunks, tiles_per_chunk),
            in_specs=[
                pl.BlockSpec((tile_n, d), emb_map),
                pl.BlockSpec((tile_n, d), emb_map),
                pl.BlockSpec((1, 1, tile_n), lbl_map),
            ],
            out_specs=pl.BlockSpec((1, 1, 1), lambda c, t: (c, 0, 0)),
            scratch_shapes=[pltpu.VMEM((1, 1), jnp.float32)],
        ),
        compiler_params=pltpu.CompilerParams(
            dimension_semantics=("parallel", "arbitrary"),
            vmem_limit_bytes=vmem_limit),
    )(text_embeds, image_embeds, labels_slab)

    return jnp.sum(partial_sums) / n


if __name__ == "__main__":
    key = jax.random.PRNGKey(0)

    def reference(t, im, l, margin=1.0, pw=1.0, nw=1.0):
        # Same math as torch.nn.functional.pairwise_distance (eps on the diff).
        t = t.astype(jnp.float32)
        im = im.astype(jnp.float32)
        dist = jnp.sqrt(jnp.sum((t - im + _EPS) ** 2, axis=-1))
        pos = pw * l * dist ** 2
        neg = nw * (1.0 - l) * jnp.clip(margin - dist, 0.0, None) ** 2
        return jnp.mean(pos + neg)

    # (N, D, tile_n, dtype, margin, pw, nw): single-block auto-tiled, ragged
    # multi-tile, even multi-tile (2-chunk on multi-TC chips), bf16 streaming.
    cases = [
        (8,   32,  None, jnp.float32,  1.0, 1.0, 1.0),
        (300, 32,  128,  jnp.float32,  0.7, 2.0, 0.5),
        (512, 128, 128,  jnp.float32,  1.0, 1.0, 1.0),
        (300, 64,  128,  jnp.bfloat16, 1.0, 1.0, 1.0),
    ]
    for n, d, tile, dt, margin, pw, nw in cases:
        k1, k2, k3, key = jax.random.split(key, 4)
        text_embeds = jax.random.normal(k1, (n, d), dtype=jnp.float32).astype(dt)
        image_embeds = jax.random.normal(k2, (n, d), dtype=jnp.float32).astype(dt)
        labels = jax.random.bernoulli(k3, 0.5, (n,)).astype(jnp.float32)

        loss = contrastive_loss(text_embeds, image_embeds, labels,
                                margin=margin, pos_weight=pw, neg_weight=nw,
                                tile_n=tile)
        jax.block_until_ready(loss)

        loss_ref = reference(text_embeds, image_embeds, labels,
                             margin=margin, pw=pw, nw=nw)
        assert jnp.allclose(loss, loss_ref, rtol=1e-5, atol=1e-5), \
            (n, d, tile, str(dt), float(loss), float(loss_ref))

    print("KERNEL_OK")
</pallas_src>

<mosaic_0001>
module attributes {stable_mosaic.version = 11 : i64} {
  func.func @_contrastive_loss_kernel(%arg0: i32, %arg1: i32, %arg2: memref<8x32xf32, #tpu.memory_space<vmem>>, %arg3: memref<8x32xf32, #tpu.memory_space<vmem>>, %arg4: memref<1x1x8xf32, #tpu.memory_space<vmem>>, %arg5: memref<1x1x1xf32, #tpu.memory_space<vmem>>, %arg6: memref<1x1xf32, #tpu.memory_space<vmem>>) attributes {dimension_semantics = [#tpu.dimension_semantics<parallel>, #tpu.dimension_semantics<arbitrary>], iteration_bounds = array<i64: 1, 1>, scalar_prefetch = 0 : i64, scratch_operands = 1 : i64, tpu.core_type = #tpu.core_type<tc>, window_params = [{transform_indices = @transform_0, window_bounds = array<i64: 8, 32>}, {transform_indices = @transform_1, window_bounds = array<i64: 8, 32>}, {transform_indices = @transform_2, window_bounds = array<i64: 1, 1, 8>}, {transform_indices = @transform_3, window_bounds = array<i64: 1, 1, 1>}]} {
    %c0_i32 = arith.constant 0 : i32
    %0 = arith.cmpi eq, %arg1, %c0_i32 : i32
    %1 = arith.extui %0 : i1 to i32
    %c0_i32_0 = arith.constant 0 : i32
    %2 = arith.cmpi ne, %1, %c0_i32_0 : i32
    scf.if %2 {
      %cst_22 = arith.constant 0.000000e+00 : f32
      %46 = vector.broadcast %cst_22 : f32 to vector<1x1xf32>
      %c0_23 = arith.constant 0 : index
      %c0_24 = arith.constant 0 : index
      %47 = vector.load %arg6[%c0_23, %c0_24] : memref<1x1xf32, #tpu.memory_space<vmem>>, vector<1x1xf32>
      tpu.vector_store %arg6[%c0_23, %c0_24], %46 {strides = array<i32>} : memref<1x1xf32, #tpu.memory_space<vmem>>, vector<1x1xf32>,
    } else {
    }
    %c0 = arith.constant 0 : index
    %c0_1 = arith.constant 0 : index
    %3 = vector.load %arg2[%c0, %c0_1] : memref<8x32xf32, #tpu.memory_space<vmem>>, vector<8x32xf32>
    %c0_2 = arith.constant 0 : index
    %c0_3 = arith.constant 0 : index
    %4 = vector.load %arg3[%c0_2, %c0_3] : memref<8x32xf32, #tpu.memory_space<vmem>>, vector<8x32xf32>
    %5 = arith.subf %3, %4 : vector<8x32xf32>
    %cst = arith.constant 9.99999997E-7 : f32
    %6 = vector.broadcast %cst : f32 to vector<8x32xf32>
    %7 = arith.addf %5, %6 : vector<8x32xf32>
    %8 = arith.mulf %7, %7 : vector<8x32xf32>
    %cst_4 = arith.constant dense<0.000000e+00> : vector<8xf32>
    %9 = vector.multi_reduction <add>, %8, %cst_4 [1] : vector<8x32xf32> to vector<8xf32>
    %10 = vector.shape_cast %9 : vector<8xf32> to vector<1x8xf32>
    %11 = math.sqrt %10 : vector<1x8xf32>
    %c0_5 = arith.constant 0 : index
    %c0_6 = arith.constant 0 : index
    %c0_7 = arith.constant 0 : index
    %12 = vector.load %arg4[%c0_5, %c0_6, %c0_7] : memref<1x1x8xf32, #tpu.memory_space<vmem>>, vector<1x1x8xf32>
    %13 = vector.shape_cast %12 : vector<1x1x8xf32> to vector<1x8xf32>
    %cst_8 = arith.constant 1.000000e+00 : f32
    %14 = vector.broadcast %cst_8 : f32 to vector<1x8xf32>
    %15 = arith.mulf %14, %13 : vector<1x8xf32>
    %16 = arith.mulf %15, %10 : vector<1x8xf32>
    %cst_9 = arith.constant 1.000000e+00 : f32
    %17 = vector.broadcast %cst_9 : f32 to vector<1x8xf32>
    %18 = arith.subf %17, %11 : vector<1x8xf32>
    %cst_10 = arith.constant 0.000000e+00 : f32
    %19 = vector.broadcast %cst_10 : f32 to vector<1x8xf32>
    %20 = arith.maximumf %18, %19 : vector<1x8xf32>
    %cst_11 = arith.constant 1.000000e+00 : f32
    %21 = vector.broadcast %cst_11 : f32 to vector<1x8xf32>
    %22 = arith.subf %21, %13 : vector<1x8xf32>
    %cst_12 = arith.constant 1.000000e+00 : f32
    %23 = vector.broadcast %cst_12 : f32 to vector<1x8xf32>
    %24 = arith.mulf %23, %22 : vector<1x8xf32>
    %25 = arith.mulf %24, %20 : vector<1x8xf32>
    %26 = arith.mulf %25, %20 : vector<1x8xf32>
    %27 = arith.addf %16, %26 : vector<1x8xf32>
    %c1_i32 = arith.constant 1 : i32
    %28 = arith.muli %arg0, %c1_i32 : i32
    %29 = arith.addi %28, %arg1 : i32
    %c8_i32 = arith.constant 8 : i32
    %30 = arith.muli %29, %c8_i32 : i32
    %31 = tpu.iota {dimensions = array<i32: 1>} : vector<1x8xi32>
    %32 = vector.broadcast %30 : i32 to vector<1x8xi32>
    %33 = arith.addi %32, %31 : vector<1x8xi32>
    %c8_i32_13 = arith.constant 8 : i32
    %34 = vector.broadcast %c8_i32_13 : i32 to vector<1x8xi32>
    %35 = arith.cmpi slt, %33, %34 : vector<1x8xi32>
    %cst_14 = arith.constant 0.000000e+00 : f32
    %36 = vector.broadcast %cst_14 : f32 to vector<1x8xf32>
    %37 = arith.select %35, %27, %36 : vector<1x8xi1>, vector<1x8xf32>
    %c0_15 = arith.constant 0 : index
    %c0_16 = arith.constant 0 : index
    %38 = vector.load %arg6[%c0_15, %c0_16] : memref<1x1xf32, #tpu.memory_space<vmem>>, vector<1x1xf32>
    %cst_17 = arith.constant dense<0.000000e+00> : vector<1xf32>
    %39 = vector.multi_reduction <add>, %37, %cst_17 [1] : vector<1x8xf32> to vector<1xf32>
    %40 = vector.shape_cast %39 : vector<1xf32> to vector<1x1xf32>
    %41 = arith.addf %38, %40 : vector<1x1xf32>
    %c0_18 = arith.constant 0 : index
    %c0_19 = arith.constant 0 : index
    %42 = vector.load %arg6[%c0_18, %c0_19] : memref<1x1xf32, #tpu.memory_space<vmem>>, vector<1x1xf32>
    tpu.vector_store %arg6[%c0_18, %c0_19], %41 {strides = array<i32>} : memref<1x1xf32, #tpu.memory_space<vmem>>, vector<1x1xf32>,
    %c0_i32_20 = arith.constant 0 : i32
    %43 = arith.cmpi eq, %arg1, %c0_i32_20 : i32
    %44 = arith.extui %43 : i1 to i32
    %c0_i32_21 = arith.constant 0 : i32
    %45 = arith.cmpi ne, %44, %c0_i32_21 : i32
    scf.if %45 {
      %c0_22 = arith.constant 0 : index
      %c0_23 = arith.constant 0 : index
      %46 = vector.load %arg6[%c0_22, %c0_23] : memref<1x1xf32, #tpu.memory_space<vmem>>, vector<1x1xf32>
      %c0_24 = arith.constant 0 : index
      %c0_25 = arith.constant 0 : index
      %c0_26 = arith.constant 0 : index
      %47 = vector.load %arg5[%c0_24, %c0_25, %c0_26] : memref<1x1x1xf32, #tpu.memory_space<vmem>>, vector<1x1x1xf32>
      %48 = vector.shape_cast %47 : vector<1x1x1xf32> to vector<1x1xf32>
      %49 = vector.shape_cast %46 : vector<1x1xf32> to vector<1x1x1xf32>
      tpu.vector_store %arg5[%c0_24, %c0_25, %c0_26], %49 {strides = array<i32>} : memref<1x1x1xf32, #tpu.memory_space<vmem>>, vector<1x1x1xf32>,
    } else {
    }
    return
  }
  func.func @transform_0(%arg0: i32, %arg1: i32) -> (i32, i32) {
    %c1_i32 = arith.constant 1 : i32
    %0 = arith.muli %arg0, %c1_i32 : i32
    %1 = arith.addi %0, %arg1 : i32
    %c0_i32 = arith.constant 0 : i32
    %2 = arith.minsi %1, %c0_i32 : i32
    %c0_i32_0 = arith.constant 0 : i32
    %c0_i32_1 = arith.constant 0 : i32
    return %2, %c0_i32_0 : i32, i32
  }
  func.func @transform_1(%arg0: i32, %arg1: i32) -> (i32, i32) {
    %c1_i32 = arith.constant 1 : i32
    %0 = arith.muli %arg0, %c1_i32 : i32
    %1 = arith.addi %0, %arg1 : i32
    %c0_i32 = arith.constant 0 : i32
    %2 = arith.minsi %1, %c0_i32 : i32
    %c0_i32_0 = arith.constant 0 : i32
    %c0_i32_1 = arith.constant 0 : i32
    return %2, %c0_i32_0 : i32, i32
  }
  func.func @transform_2(%arg0: i32, %arg1: i32) -> (i32, i32, i32) {
    %c1_i32 = arith.constant 1 : i32
    %0 = arith.muli %arg0, %c1_i32 : i32
    %1 = arith.addi %0, %arg1 : i32
    %c0_i32 = arith.constant 0 : i32
    %2 = arith.minsi %1, %c0_i32 : i32
    %c0_i32_0 = arith.constant 0 : i32
    %c0_i32_1 = arith.constant 0 : i32
    %c0_i32_2 = arith.constant 0 : i32
    return %2, %c0_i32_0, %c0_i32_1 : i32, i32, i32
  }
  func.func @transform_3(%arg0: i32, %arg1: i32) -> (i32, i32, i32) {
    %c0_i32 = arith.constant 0 : i32
    %c0_i32_0 = arith.constant 0 : i32
    %c0_i32_1 = arith.constant 0 : i32
    return %arg0, %c0_i32, %c0_i32_0 : i32, i32, i32
  }
}

</mosaic_0001>

<bundles_post_ra>
// kernel: tpu_custom_call.1
= control target key start
LH: loop header
LB: loop body
LE: loop exit
PB: predicated region body
PF: predicated region fallthrough
CT: control target
= control target key end

     0   :  { %8 = vsyncpa [#allocation4], 0  ;;  %s562_s0 = inlined_call_operand.hbm [shape: f32[8,32], index: 0, kind: input, shape index: {}]   ;;  %s563_s1 = inlined_call_operand.hbm [shape: f32[8,32], index: 1, kind: input, shape index: {}]   ;;  %s564_s2 = inlined_call_operand.vmem [shape: f32[1,1,8], index: 2, kind: input, shape index: {}]   ;;  %s565_s3 = inlined_call_operand.hbm [shape: f32[1,1,1], index: 3, kind: output, shape index: {}]  }
   0x1   :  { %9 = vsyncpa [#allocation7], 0 }
   0x2   :  { %10 = vsyncpa [#allocation5], 0  ;;  %s465_s12 = smov [#allocation3]   ;;  %s466_s14 = smov [#allocation6]  }
   0x3   :  { %s22_s13 = sshll.u32 %s465_s12, 4  ;;  %s37_s15 = sshll.u32 %s466_s14, 4  ;;  %s23_s13 = int_to_ptr.vmem [resolvable:$true] %s22_s13  ;;  %s38_s15 = int_to_ptr.vmem [resolvable:$true] %s37_s15 }
   0x4   :  { %s393_s18 = scalar_lea.hbm %s562_s0, 128 }
   0x5   :  { %p394_p0 = scmp.ne.s32.totalorder %s562_s0, %s393_s18  ;;  %p397_p1 = scmp.lt.u32.totalorder %s393_s18, %s562_s0 }
   0x7   :  { %p399_p2 = pnand %p397_p1, %p394_p0 }
   0x9   :  { %402 = shalt.err (!%p399_p2)
}
   0xa   :  { %s403_s23 = scalar_lea.vmem %s23_s13, 128  ;;  %p408_p4 = scmp.lt.s32.totalorder %s23_s13, %s23_s13 }
   0xb   :  { %p404_p3 = scmp.ne.s32.totalorder %s23_s13, %s403_s23  ;;  %p409_p5 = scmp.lt.s32.totalorder %s403_s23, %s403_s23 }
   0xd   :  { %p410_p6 = por %p409_p5, %p408_p4 }
   0xf   :  { %p411_p7 = pnand %p410_p6, %p404_p3 }
  0x11   :  { %414 = shalt.err (!%p411_p7)
}
  0x12   :  { %25 = dma.hbm_to_vmem [thread:$0]  %s562_s0, 128, %s23_s13, [#allocation4]  }
  0x13   :  { %s415_s28 = scalar_lea.hbm %s563_s1, 128 }
  0x14   :  { %p416_p8 = scmp.ne.s32.totalorder %s563_s1, %s415_s28  ;;  %p419_p9 = scmp.lt.u32.totalorder %s415_s28, %s563_s1 }
  0x16   :  { %p421_p10 = pnand %p419_p9, %p416_p8 }
  0x18   :  { %424 = shalt.err (!%p421_p10)
}
  0x19   :  { %s425_s6 = scalar_lea.vmem %s38_s15, 128  ;;  %p430_p12 = scmp.lt.s32.totalorder %s38_s15, %s38_s15 }
  0x1a   :  { %p426_p11 = scmp.ne.s32.totalorder %s38_s15, %s425_s6  ;;  %p431_p13 = scmp.lt.s32.totalorder %s425_s6, %s425_s6 }
  0x1c   :  { %p432_p0 = por %p431_p13, %p430_p12 }
  0x1e   :  { %p433_p1 = pnand %p432_p0, %p426_p11 }
  0x20   :  { %436 = shalt.err (!%p433_p1)
}
  0x21   :  { %40 = dma.hbm_to_vmem [thread:$0]  %s563_s1, 128, %s38_s15, [#allocation7]  }
  0x22   :  { %459 = dma.done.wait [#allocation4], 128  }
  0x23   :  { %460 = vsyncadd [#allocation4], 4294967168 }
  0x24   :  { %461 = dma.done.wait [#allocation7], 128  }
  0x25   :  { %462 = vsyncadd [#allocation7], 4294967168  ;;  %v85_v0 = vld [vmem:[#allocation3] sm:$0xff]  ;;  %v86_v1 = vld [vmem:[#allocation6] sm:$0xff]  ;;  %vm90_vm0 = vcmask 261120   ;;  %v467_v6 = vmov 0   ;;  %v103_v7 = vlaneseq }
  0x26   :  { %v87_v2 = vsub.f32 %v85_v0, %v86_v1  ;;  %390 = vset.pattern.permute.xlu1 %v467_v6  ;;  %389 = vset.pattern.permute.xlu0 %v467_v6  ;;  %v468_v11 = vmov 1966171168   ;;  %vm83_vm3 = vcmask 0   ;;  %vm348_vm5 = vcmask 57344  }
  0x27   :  { %v104_v8 = vshrl.u32 %v103_v7, 7  ;;  %v515_v9 = vand.u32 127, %v103_v7  ;;  %v140_v12 = vunpack.c.l.s4 %v468_v11  ;;  %v469_v11 = vmov 0.0  }
  0x28   :  { %v88_v3 = vadd.f32 1e-06, %v87_v2  ;;  %84 = vst.msk [vmem:[#allocation2] sm:$0x1] %vm83_vm3, %v469_v11 }
  0x29   :  { %v518_v10 = vsub.s32 %v515_v9, %v104_v8  ;;  %v141_v13 = vunpack.c.0.s8 %v140_v12  ;;  %v105_v14 = vsub.s32 0, %v104_v8  ;;  %v109_v15 = vsub.s32 1, %v104_v8 }
  0x2a   :  { %v89_v4 = vmul.f32 %v88_v3, %v88_v3  ;;  %v113_v16 = vsub.s32 2, %v104_v8  ;;  %v117_v17 = vsub.s32 3, %v104_v8  ;;  %v121_v18 = vsub.s32 4, %v104_v8 }
  0x2b   :  { %v125_v19 = vsub.s32 5, %v104_v8  ;;  %v129_v20 = vsub.s32 6, %v104_v8  ;;  %v133_v21 = vsub.s32 7, %v104_v8  ;;  %v520_v23 = vsub.s32 %v141_v13, %v104_v8 }
  0x2c   :  { %v91_v5 = vsel %vm90_vm0, %v89_v4, 0.0  ;;  %vm345_vm4 = vcmp.lt.s32.totalorder %v515_v9, 8 }
  0x2d   :  { %92 = vadd.xlane.f32.xlu0 %v91_v5 }
  0xba   :  { %v93_v22 = vpop.xlane.xlu0 %92 }
  0xbb   :  { %391 = vrsqrt.f32 %v93_v22  ;;  %v106_v24 = vrot.slane %v93_v22, %v105_v14  ;;  %v110_v25 = vrot.slane %v93_v22, %v109_v15  ;;  %v114_v26 = vrot.slane %v93_v22, %v113_v16 }
  0xbc   :  { %v118_v27 = vrot.slane %v93_v22, %v117_v17  ;;  %v122_v28 = vrot.slane %v93_v22, %v121_v18  ;;  %v126_v29 = vrot.slane %v93_v22, %v125_v19  ;;  %v130_v30 = vrot.slane %v93_v22, %v129_v20 }
  0xbd   :  { %v134_v31 = vrot.slane %v93_v22, %v133_v21  ;;  %v135_v32 = vcombine.low %v106_v24, %v110_v25  ;;  %vm96_vm1 = vcmp.eq.f32.partialorder %v93_v22, inf  ;;  %v99_v47 = vand.u32 2147483648, %v93_v22 }
  0xbe   :  { %v136_v33 = vcombine.low %v114_v26, %v118_v27  ;;  %v137_v34 = vcombine.low %v122_v28, %v126_v29  ;;  %vm98_vm2 = vcmp.eq.f32.partialorder %v93_v22, 0.0 }
  0xbf   :  { %v138_v35 = vcombine.low %v130_v30, %v134_v31  ;;  %v145_v36 = vrot.slane %v135_v32, %v520_v23  ;;  %v347_v32 = vld [vmem:[#allocation2] sm:$0x1] }
  0xc0   :  { %v152_v37 = vrot.slane %v136_v33, %v520_v23  ;;  %v159_v38 = vrot.slane %v137_v34, %v520_v23 }
  0xc1   :  { %v166_v39 = vrot.slane %v138_v35, %v520_v23 }
  0xc2   :  { %v167_v40 = vcombine.low %v145_v36, %v152_v37 }
  0xc3   :  { %v168_v41 = vcombine.low %v159_v38, %v166_v39 }
  0xc4   :  { %v175_v42 = vrot.slane %v167_v40, %v520_v23 }
  0xc5   :  { %v392_v43 = vpop.eup %391  ;;  %v182_v44 = vrot.slane %v168_v41, %v520_v23 }
  0xc6   :  { %v95_v45 = vmul.f32 %v392_v43, %v93_v22 }
  0xc7   :  { %v183_v46 = vcombine.low %v175_v42, %v182_v44 }
  0xc8   :  { %v97_v48 = vsel %vm96_vm1, %v93_v22, %v95_v45 }
  0xc9   :  { %185 = vperm.xlu1 %390, %v183_v46   ;;  %v100_v49 = vsel %vm98_vm2, %v99_v47, %v97_v48 }
  0xca   :  { %v209_v50 = vsub.f32 1.0, %v100_v49 }
  0xcc   :  { %v210_v51 = vmax.f32 %v209_v50, 0.0 }
  0xce   :  { %v216_v52 = vrot.slane %v210_v51, %v105_v14  ;;  %v220_v53 = vrot.slane %v210_v51, %v109_v15  ;;  %v224_v54 = vrot.slane %v210_v51, %v113_v16  ;;  %v228_v55 = vrot.slane %v210_v51, %v117_v17 }
  0xcf   :  { %v232_v56 = vrot.slane %v210_v51, %v121_v18  ;;  %v236_v57 = vrot.slane %v210_v51, %v125_v19  ;;  %v240_v58 = vrot.slane %v210_v51, %v129_v20  ;;  %v244_v59 = vrot.slane %v210_v51, %v133_v21  ;;  %v101_v19 = vld [vmem:[%s564_s2] sm:$0x1]  ;;  %s470_s2 = smov [#allocation8]  }
  0xd0   :  { %v245_v60 = vcombine.low %v216_v52, %v220_v53  ;;  %v246_v61 = vcombine.low %v224_v54, %v228_v55  ;;  %v211_v21 = vsub.f32 1.0, %v101_v19  ;;  %s366_s9 = sshll.u32 %s470_s2, 4  ;;  %s367_s9 = int_to_ptr.vmem [resolvable:$true] %s366_s9 }
  0xd1   :  { %v247_v62 = vcombine.low %v232_v56, %v236_v57  ;;  %v248_v63 = vcombine.low %v240_v58, %v244_v59  ;;  %s437_s10 = scalar_lea.vmem %s367_s9, 16  ;;  %s441_s11 = scalar_lea.vmem %s367_s9, 32 }
  0xd2   :  { %v255_v0 = vrot.slane %v245_v60, %v520_v23  ;;  %v262_v1 = vrot.slane %v246_v61, %v520_v23  ;;  %p438_p2 = scmp.ne.s32.totalorder %s367_s9, %s437_s10  ;;  %p442_p3 = scmp.lt.s32.totalorder %s367_s9, %s367_s9 }
  0xd3   :  { %v269_v2 = vrot.slane %v247_v62, %v520_v23  ;;  %v276_v3 = vrot.slane %v248_v63, %v520_v23  ;;  %p443_p4 = scmp.lt.s32.totalorder %s441_s11, %s437_s10 }
  0xd4   :  { %v277_v4 = vcombine.low %v255_v0, %v262_v1 }
  0xd5   :  { %v278_v5 = vcombine.low %v269_v2, %v276_v3  ;;  %p444_p5 = por %p443_p4, %p442_p3 }
  0xd6   :  { %v285_v6 = vrot.slane %v277_v4, %v520_v23 }
  0xd7   :  { %v292_v7 = vrot.slane %v278_v5, %v520_v23  ;;  %p445_p6 = pnand %p444_p5, %p438_p2 }
  0xd9   :  { %v293_v8 = vcombine.low %v285_v6, %v292_v7 }
  0xdb   :  { %318 = vperm.xlu1 %390, %v293_v8   ;;  %295 = vperm.xlu0 %389, %v293_v8  }
 0x148   :  { %v186_v12 = vpop.permute.xlu1 %185 }
 0x149   :  { %v192_v13 = vrot.slane %v186_v12, %v518_v10 }
 0x14b   :  { %v199_v16 = vrot.slane %v192_v13, %v520_v23 }
 0x14d   :  { %v206_v24 = vrot.slane %v199_v16, %v520_v23 }
 0x14f   :  { %v208_v28 = vmul.f32 %v206_v24, %v101_v19 }
 0x15a   :  { %v319_v14 = vpop.permute.xlu1 %318  ;;  %v296_v15 = vpop.permute.xlu0 %295 }
 0x15b   :  { %v323_v17 = vrot.slane %v319_v14, %v518_v10  ;;  %v300_v18 = vrot.slane %v296_v15, %v518_v10 }
 0x15d   :  { %v330_v20 = vrot.slane %v323_v17, %v520_v23  ;;  %v307_v22 = vrot.slane %v300_v18, %v520_v23 }
 0x15f   :  { %v314_v25 = vrot.slane %v307_v22, %v520_v23  ;;  %v337_v26 = vrot.slane %v330_v20, %v520_v23 }
 0x161   :  { %v316_v27 = vmul.f32 %v314_v25, %v211_v21 }
 0x163   :  { %v339_v29 = vmul.f32 %v337_v26, %v316_v27 }
 0x165   :  { %v340_v10 = vadd.f32 %v339_v29, %v208_v28 }
 0x167   :  { %v346_v30 = vsel %vm345_vm4, %v340_v10, 0.0 }
 0x168   :  { %v349_v31 = vsel %vm348_vm5, %v346_v30, 0.0 }
 0x169   :  { %350 = vadd.xlane.f32.xlu1 %v349_v31 }
 0x1f6   :  { %v351_v33 = vpop.xlane.xlu1 %350 }
 0x1f7   :  { %v352_v34 = vadd.f32 %v351_v33, %v347_v32 }
 0x1f9   :  { %354 = vst.msk [vmem:[#allocation2] sm:$0x1] %vm83_vm3, %v352_v34 }
 0x200   :  { %v358_v35 = vld [vmem:[#allocation2] sm:$0x1] }
 0x201   :  { %359 = vst.msk [vmem:[#allocation8] sm:$0x1] %vm83_vm3, %v358_v35 }
 0x202   :  { %448 = shalt.err (!%p445_p6)
}
 0x203   :  { %s449_s14 = scalar_lea.hbm %s565_s3, 16 }
 0x204   :  { %p450_p7 = scmp.ne.s32.totalorder %s565_s3, %s449_s14  ;;  %p453_p8 = scmp.lt.u32.totalorder %s449_s14, %s565_s3 }
 0x206   :  { %p455_p9 = pnand %p453_p8, %p450_p7 }
 0x208   :  { %458 = shalt.err (!%p455_p9)
}
 0x209   :  { %369 = dma.vmem_to_hbm [thread:$0]  %s367_s9, 16, %s565_s3, [#allocation5]  }
 0x20a   :  { %463 = dma.done.wait [#allocation5], 16  }
 0x20b   :  { %464 = vsyncadd [#allocation5], 4294967280 }
 0x20c   :  { %373 = vsyncpa [#allocation4], 1 }
 0x20d   :  { %374 = vsyncpa [#allocation7], 1 }
 0x20e   :  { %375 = vsyncpa [#allocation5], 1 }

</bundles_post_ra>
